<compile_context>
chip_gen: v6e
topology: v6e:2x2x1
jax: 0.10.0
libtpu: 0.0.40
codegen_flags: <defaults>
</compile_context>

<pallas_src>
import functools

import jax
import jax.numpy as jnp
from jax import lax
from jax.experimental import pallas as pl
from jax.experimental.pallas import tpu as pltpu

_NEG_INF = -1e30
_LN_EPS = 1e-5


def _round_up(x, m):
    return ((x + m - 1) // m) * m


@functools.lru_cache(maxsize=None)
def _hw_budgets():
    """Generation-aware block / VMEM budgets (best-effort hardware query)."""
    kind = ""
    try:
        kind = jax.devices()[0].device_kind.lower()
    except Exception:
        pass
    vmem_cap = None
    try:
        vmem_cap = int(pltpu.get_tpu_info().vmem_capacity_bytes)
    except Exception:
        pass
    is_v7 = ("v7" in kind) or (vmem_cap is not None and vmem_cap <= (64 << 20))
    is_v5e = ("v5 lite" in kind) or ("v5e" in kind) or ("v5lite" in kind)
    if is_v7:
        # 64 MiB physical VMEM, 3.2 TB/s HBM: larger blocks, tighter caps.
        return {"block_target": 6 << 20, "slab_budget": 9 << 20,
                "vmem_soft": 24 << 20, "vmem_cap": 48 << 20}
    if is_v5e:
        # 128 MiB physical VMEM but only ~16 MiB default scoped limit.
        return {"block_target": 4 << 20, "slab_budget": 12 << 20,
                "vmem_soft": 14 << 20, "vmem_cap": 96 << 20}
    # v6e / v5p / unknown: 128 MiB VMEM, ~32 MiB default scoped limit.
    return {"block_target": 6 << 20, "slab_budget": 14 << 20,
            "vmem_soft": 24 << 20, "vmem_cap": 96 << 20}


def _make_whole_slab_kernel(bb):
    """One grid step = one (bb, C, HW) batch block; fully fused single pass."""

    def kernel(x_ref, cpack_ref, ppack_ref, w1t_ref, w2_ref, o_ref):
        x = x_ref[...]                                   # (bb, C, HW), streaming dtype
        xdt = x.dtype
        C = x.shape[1]
        wm = cpack_ref[0:1, :]                           # (1, C) f32  conv_mask weight
        b2 = cpack_ref[1:2, :]                           # (1, C) f32  2nd conv bias
        b1 = ppack_ref[0:1, :]                           # (1, P)      1st conv bias
        g = ppack_ref[1:2, :]                            # (1, P)      LayerNorm gamma
        beta = ppack_ref[2:3, :]                         # (1, P)      LayerNorm beta

        # --- spatial_pool ('att'): softmax over HW of 1x1 conv C->1.
        # conv_mask bias is folded out (softmax is shift-invariant).
        wm_b = jnp.broadcast_to(wm.astype(xdt)[None], (bb, 1, C))
        logits = jnp.einsum("boc,bcs->bos", wm_b, x,
                            preferred_element_type=jnp.float32)         # (bb,1,HW) f32
        logits = logits - jnp.max(logits, axis=-1, keepdims=True)
        e = jnp.exp(logits)
        p = e * pl.reciprocal(jnp.sum(e, axis=-1, keepdims=True), approx=False)

        # context[b, c] = sum_s x[b, c, s] * p[b, s]
        ctx = jnp.einsum("bos,bcs->boc", p.astype(xdt), x,
                         preferred_element_type=jnp.float32)            # (bb,1,C) f32

        # --- channel_add_conv: 1x1 conv (C->P) -> LayerNorm -> ReLU -> 1x1 conv (P->C)
        y1 = jnp.einsum("boc,cp->bop", ctx, w1t_ref[...],
                        preferred_element_type=jnp.float32) + b1[None]   # (bb,1,P)
        mu = jnp.mean(y1, axis=-1, keepdims=True)
        var = jnp.mean(jnp.square(y1 - mu), axis=-1, keepdims=True)
        y1 = (y1 - mu) * lax.rsqrt(var + _LN_EPS) * g[None] + beta[None]
        y1 = jnp.maximum(y1, 0.0)
        add = jnp.einsum("bop,cp->boc", y1, w2_ref[...],
                         preferred_element_type=jnp.float32) + b2[None]  # (bb,1,C)

        # fusion: out = x + channel_add term broadcast over spatial.  The
        # (bb,1,C)->(bb,C,1) reshape is order-preserving (middle dim is 1).
        add_col = jnp.reshape(add, (bb, C, 1)).astype(xdt)
        o_ref[...] = x + add_col

    return kernel


def _make_hw_tiled_kernel(HW, t_hw, nt):
    """Two-pass HW-tiled kernel for slabs too large for the VMEM budget.

    Grid = (B, 2*nt), HW axis marked 'arbitrary':
      pass A (t <  nt): online softmax + context accumulation over HW tiles.
      pass B (t >= nt): re-stream the HW tiles, write x + channel_add term.
    Only one (1, C, t_hw) tile is resident at a time (plus tiny scratch).
    """
    ragged = (HW % t_hw) != 0

    def kernel(x_ref, cpack_ref, ppack_ref, w1t_ref, w2_ref, o_ref,
               m_sc, l_sc, ctx_sc, add_sc):
        t = pl.program_id(1)

        @pl.when(t == 0)
        def _init():
            m_sc[...] = jnp.full_like(m_sc, _NEG_INF)
            l_sc[...] = jnp.zeros_like(l_sc)
            ctx_sc[...] = jnp.zeros_like(ctx_sc)

        @pl.when(t < nt)
        def _pass_a():
            xi = x_ref[0]                                    # (C, t_hw), streaming dtype
            wm = cpack_ref[0:1, :].astype(xi.dtype)          # (1, C)
            if ragged:
                # Last tile's tail is out of bounds: zero x there (guards junk in
                # the partial DMA region) and mask its logits to -inf (in f32).
                pos = (t % nt) * t_hw + lax.broadcasted_iota(jnp.int32, (1, t_hw), 1)
                in_b = pos < HW
                xi = jnp.where(in_b, xi, jnp.zeros_like(xi))
            logits = jnp.dot(wm, xi, preferred_element_type=jnp.float32)  # (1, t_hw)
            if ragged:
                logits = jnp.where(in_b, logits, _NEG_INF)

            m_prev = m_sc[...]
            m_new = jnp.maximum(m_prev, jnp.max(logits, axis=-1, keepdims=True))
            alpha = jnp.exp(m_prev - m_new)
            p = jnp.exp(logits - m_new)
            l_sc[...] = alpha * l_sc[...] + jnp.sum(p, axis=-1, keepdims=True)
            ctx_sc[...] = alpha * ctx_sc[...] + lax.dot_general(
                p.astype(xi.dtype), xi, (((1,), (1,)), ((), ())),
                preferred_element_type=jnp.float32)                        # (1, C)
            m_sc[...] = m_new

            @pl.when(t == nt - 1)
            def _finalize():
                b2 = cpack_ref[1:2, :]                                     # (1, C)
                b1 = ppack_ref[0:1, :]
                g = ppack_ref[1:2, :]
                beta = ppack_ref[2:3, :]
                ctx = ctx_sc[...] * pl.reciprocal(l_sc[...], approx=False)  # (1, C)
                y1 = jnp.dot(ctx, w1t_ref[...],
                             preferred_element_type=jnp.float32) + b1       # (1, P)
                mu = jnp.mean(y1, axis=-1, keepdims=True)
                var = jnp.mean(jnp.square(y1 - mu), axis=-1, keepdims=True)
                y1 = (y1 - mu) * lax.rsqrt(var + _LN_EPS) * g + beta
                y1 = jnp.maximum(y1, 0.0)
                add = lax.dot_general(w2_ref[...], y1, (((1,), (1,)), ((), ())),
                                      preferred_element_type=jnp.float32)   # (C, 1)
                add_sc[...] = add + jnp.reshape(b2, (b2.shape[1], 1))

        @pl.when(t >= nt)
        def _pass_b():
            xi = x_ref[0]                                    # (C, t_hw)
            o_ref[0] = xi + add_sc[...].astype(xi.dtype)

    return kernel


def _pick_batch_block(B, per_slab_bytes, block_target):
    if B <= 1:
        return 1
    divs = [d for d in range(1, B + 1) if B % d == 0]
    fitting = [d for d in divs if d * per_slab_bytes <= block_target]
    bb = max(fitting) if fitting else 1
    if bb == B:
        # Keep >= 2 grid steps so both TensorCores (v7x) get work and the
        # pipeline can overlap one block's compute with the next block's DMA.
        bb = max(d for d in divs if d < B)
    return bb


def global_context_block(x, params, *, batch_block=None, hw_tile=None,
                         force_tiled=False):
    """Pallas TPU forward for GlobalContextBlock ('att' pooling, channel_add fusion).

    x: (B, C, H, W) in f32 or bf16; output dtype == input dtype.
    """
    B, C, H, W = x.shape
    HW = H * W
    P = params["w1"].shape[0]
    dtype = x.dtype
    itemsize = jnp.dtype(dtype).itemsize
    budgets = _hw_budgets()

    # Packed tiny constants (2 DMAs instead of 6); conv_mask bias bm is folded
    # out because softmax is invariant to a constant logit offset.
    cpack = jnp.stack([params["wm"].reshape(C),
                       params["b2"].reshape(C)]).astype(jnp.float32)       # (2, C)
    ppack = jnp.stack([params["b1"].reshape(P),
                       params["ln_g"].reshape(P),
                       params["ln_b"].reshape(P)]).astype(jnp.float32)     # (3, P)
    w1t = params["w1"].astype(jnp.float32).T                               # (C, P)
    w2 = params["w2"].astype(jnp.float32)                                  # (C, P)
    weights = (cpack, ppack, w1t, w2)
    weight_bytes = sum(int(w.size) * 4 for w in weights)

    # Padded sizes for VMEM sizing only -- x itself is never padded/copied.
    sublane = 8 * max(1, 4 // itemsize)
    Cp = _round_up(C, sublane)
    HWp = _round_up(HW, 128)
    per_slab = Cp * HWp * itemsize

    x3 = x.reshape(B, C, HW)   # contiguous trailing-dim merge: free in XLA

    # The tiled path streams x twice (3x HBM traffic vs 2x for the fused path),
    # so use it only when one (C, HW) slab does not fit the VMEM budget.
    use_tiled = force_tiled or (per_slab > budgets["slab_budget"] and HWp > 128)

    if not use_tiled:
        if batch_block is not None:
            req = max(1, min(int(batch_block), B))
            bb = max(d for d in range(1, req + 1) if B % d == 0)
        else:
            bb = _pick_batch_block(B, per_slab, budgets["block_target"])
        nb = B // bb
        # TODO(synk): for B == 1 the whole-slab path is a single grid step (no
        # DMA/compute overlap, one v7x TensorCore); a C-tiled single-pass
        # variant would be needed to pipeline that case without 3x traffic.
        grid = (nb,)
        dim_sem = ("parallel",)
        kernel = _make_whole_slab_kernel(bb)
        x_spec = pl.BlockSpec((bb, C, HW), lambda b: (b, 0, 0))
        out_spec = pl.BlockSpec((bb, C, HW), lambda b: (b, 0, 0))
        scratch = []
        block_vmem = bb * per_slab
        tmp_vmem = 3 * bb * HWp * 4            # logits / exp / p temporaries (f32)
    else:
        if hw_tile is not None:
            t_hw = max(128, (int(hw_tile) // 128) * 128)
        else:
            t_hw = max(128, (budgets["block_target"] // max(Cp * itemsize, 1) // 128) * 128)
        # Never let a tile start past the array end (only the last tile is ragged).
        t_hw = min(t_hw, max(128, (HW // 128) * 128))
        nt = (HW + t_hw - 1) // t_hw
        grid = (B, 2 * nt)
        dim_sem = ("parallel", "arbitrary")
        kernel = _make_hw_tiled_kernel(HW, t_hw, nt)
        x_spec = pl.BlockSpec((1, C, t_hw), lambda b, t: (b, 0, t % nt))
        out_spec = pl.BlockSpec(
            (1, C, t_hw), lambda b, t: (b, 0, jnp.where(t < nt, 0, t - nt)))
        scratch = [pltpu.VMEM((1, 1), jnp.float32),   # running max
                   pltpu.VMEM((1, 1), jnp.float32),   # running sum
                   pltpu.VMEM((1, C), jnp.float32),   # context accumulator
                   pltpu.VMEM((C, 1), jnp.float32)]   # channel_add column
        block_vmem = Cp * t_hw * itemsize
        tmp_vmem = 4 * t_hw * 4

    # Raise the scoped-VMEM limit only when the block plan needs it; trigger and
    # cap are generation-aware (v5e default scoped limit ~16 MiB; v7x has only
    # 64 MiB physical VMEM so cap at 48 MiB to leave compiler headroom).
    est_vmem = 4 * block_vmem + 2 * weight_bytes + tmp_vmem + (2 << 20)
    vmem_limit = None
    if est_vmem > budgets["vmem_soft"]:
        vmem_limit = int(min(max(est_vmem * 5 // 4, budgets["vmem_soft"]),
                             budgets["vmem_cap"]))

    def const_spec(shape):
        nd = len(shape)
        return pl.BlockSpec(shape, lambda *_: (0,) * nd)

    out = pl.pallas_call(
        kernel,
        out_shape=jax.ShapeDtypeStruct((B, C, HW), dtype),
        grid_spec=pltpu.PrefetchScalarGridSpec(
            num_scalar_prefetch=0,
            grid=grid,
            in_specs=[x_spec] + [const_spec(tuple(w.shape)) for w in weights],
            out_specs=out_spec,
            scratch_shapes=scratch,
        ),
        compiler_params=pltpu.CompilerParams(
            dimension_semantics=dim_sem,
            vmem_limit_bytes=vmem_limit,
        ),
    )(x3, *weights)

    return out.reshape(B, C, H, W)


def reference(x, params):
    """Pure-JAX reference matching the PyTorch forward (att pooling, channel_add)."""
    B, C, H, W = x.shape
    xf = x.reshape(B, C, H * W)
    logits = jnp.einsum("c,bcs->bs", params["wm"], xf) + params["bm"]
    p = jax.nn.softmax(logits, axis=-1)
    ctx = jnp.einsum("bcs,bs->bc", xf, p)
    y1 = ctx @ params["w1"].T + params["b1"]
    mu = y1.mean(-1, keepdims=True)
    var = ((y1 - mu) ** 2).mean(-1, keepdims=True)
    y1n = (y1 - mu) / jnp.sqrt(var + _LN_EPS) * params["ln_g"] + params["ln_b"]
    y1n = jnp.maximum(y1n, 0.0)
    add = y1n @ params["w2"].T + params["b2"]
    return x + add[:, :, None, None]


def init_params(key, inplanes, ratio):
    planes = int(inplanes * ratio)
    ks = jax.random.split(key, 6)
    scale = 0.1
    return {
        # conv_mask: Conv2d(inplanes, 1, 1)
        "wm": scale * jax.random.normal(ks[0], (inplanes,), jnp.float32),
        "bm": scale * jax.random.normal(ks[1], (1,), jnp.float32),
        # channel_add_conv[0]: Conv2d(inplanes, planes, 1)
        "w1": scale * jax.random.normal(ks[2], (planes, inplanes), jnp.float32),
        "b1": scale * jax.random.normal(ks[3], (planes,), jnp.float32),
        # channel_add_conv[1]: LayerNorm([planes, 1, 1])
        "ln_g": jnp.ones((planes,), jnp.float32),
        "ln_b": jnp.zeros((planes,), jnp.float32),
        # channel_add_conv[3]: Conv2d(planes, inplanes, 1)
        "w2": scale * jax.random.normal(ks[4], (inplanes, planes), jnp.float32),
        "b2": scale * jax.random.normal(ks[5], (inplanes,), jnp.float32),
    }


if __name__ == "__main__":
    # TODO(synk): only the default config (pooling_type='att',
    # fusion=('channel_add',)) is implemented; the 'avg' pooling and
    # 'channel_mul' branches are not emitted.
    key = jax.random.PRNGKey(0)
    kx, kp, kx2, kp2, kx3, kp3, kx4 = jax.random.split(key, 7)
    ratio = 0.25

    # --- main shape (HW a multiple of 128) ---
    B, C, H, W = 2, 16, 16, 16
    x = jax.random.normal(kx, (B, C, H, W), jnp.float32)
    params = init_params(kp, C, ratio)
    ref = reference(x, params)

    # 1) default fused whole-slab path (f32), >=2 grid steps
    out = jax.block_until_ready(global_context_block(x, params))
    assert out.shape == ref.shape and out.dtype == ref.dtype
    assert jnp.allclose(out, ref, atol=1e-4, rtol=1e-4), \
        float(jnp.max(jnp.abs(out - ref)))

    # 2) HW-tiled two-pass (online-softmax) path, as used for very large C*HW
    out_t = jax.block_until_ready(
        global_context_block(x, params, force_tiled=True, hw_tile=128))
    assert jnp.allclose(out_t, ref, atol=1e-4, rtol=1e-4), \
        float(jnp.max(jnp.abs(out_t - ref)))

    # 3) native bf16 streaming (input already bf16 upstream; no wrapper cast)
    x_bf = x.astype(jnp.bfloat16)
    out_bf = jax.block_until_ready(global_context_block(x_bf, params))
    assert out_bf.dtype == jnp.bfloat16
    ref_bf = reference(x_bf.astype(jnp.float32), params)
    assert jnp.allclose(out_bf.astype(jnp.float32), ref_bf, atol=1e-1, rtol=1e-1)

    # --- odd shape: HW=81 (not a multiple of 128), B=3 -- no wrapper pad/slice,
    #     masked tail stores, bb chosen as a divisor of B ---
    B2, C2, H2, W2 = 3, 8, 9, 9
    x2 = jax.random.normal(kx2, (B2, C2, H2, W2), jnp.float32)
    params2 = init_params(kp2, C2, ratio)
    ref2 = reference(x2, params2)
    out2 = jax.block_until_ready(global_context_block(x2, params2))
    assert jnp.allclose(out2, ref2, atol=1e-4, rtol=1e-4), \
        float(jnp.max(jnp.abs(out2 - ref2)))
    out2b = jax.block_until_ready(global_context_block(x2, params2, batch_block=3))
    assert jnp.allclose(out2b, ref2, atol=1e-4, rtol=1e-4), \
        float(jnp.max(jnp.abs(out2b - ref2)))

    # --- ragged HW tile in the tiled path: HW=144, t_hw=128 -> second tile partial ---
    B3, C3, H3, W3 = 2, 8, 12, 12
    x3 = jax.random.normal(kx3, (B3, C3, H3, W3), jnp.float32)
    params3 = init_params(kp3, C3, ratio)
    ref3 = reference(x3, params3)
    out3 = jax.block_until_ready(
        global_context_block(x3, params3, force_tiled=True, hw_tile=128))
    assert jnp.allclose(out3, ref3, atol=1e-4, rtol=1e-4), \
        float(jnp.max(jnp.abs(out3 - ref3)))

    # --- batched batch-block (bb=2, nb=2) with HW < 128 (masked lane store) ---
    B4, C4, H4, W4 = 4, 16, 8, 8
    x4 = jax.random.normal(kx4, (B4, C4, H4, W4), jnp.float32)
    ref4 = reference(x4, params)
    out4 = jax.block_until_ready(global_context_block(x4, params))
    assert jnp.allclose(out4, ref4, atol=1e-4, rtol=1e-4), \
        float(jnp.max(jnp.abs(out4 - ref4)))

    print("KERNEL_OK")
</pallas_src>

<mosaic_0001>
module attributes {stable_mosaic.version = 11 : i64} {
  func.func @kernel(%arg0: i32, %arg1: memref<1x16x256xf32, #tpu.memory_space<vmem>>, %arg2: memref<2x16xf32, #tpu.memory_space<vmem>>, %arg3: memref<3x4xf32, #tpu.memory_space<vmem>>, %arg4: memref<16x4xf32, #tpu.memory_space<vmem>>, %arg5: memref<16x4xf32, #tpu.memory_space<vmem>>, %arg6: memref<1x16x256xf32, #tpu.memory_space<vmem>>) attributes {dimension_semantics = [#tpu.dimension_semantics<parallel>], iteration_bounds = array<i64: 2>, scalar_prefetch = 0 : i64, scratch_operands = 0 : i64, tpu.core_type = #tpu.core_type<tc>, window_params = [{transform_indices = @transform_0, window_bounds = array<i64: 1, 16, 256>}, {pipeline_mode = #tpu.pipeline_mode<synchronous>, transform_indices = @transform_1, window_bounds = array<i64: 2, 16>}, {pipeline_mode = #tpu.pipeline_mode<synchronous>, transform_indices = @transform_2, window_bounds = array<i64: 3, 4>}, {pipeline_mode = #tpu.pipeline_mode<synchronous>, transform_indices = @transform_3, window_bounds = array<i64: 16, 4>}, {pipeline_mode = #tpu.pipeline_mode<synchronous>, transform_indices = @transform_4, window_bounds = array<i64: 16, 4>}, {transform_indices = @transform_5, window_bounds = array<i64: 1, 16, 256>}]} {
    %c0 = arith.constant 0 : index
    %c0_0 = arith.constant 0 : index
    %c0_1 = arith.constant 0 : index
    %0 = vector.load %arg1[%c0, %c0_0, %c0_1] : memref<1x16x256xf32, #tpu.memory_space<vmem>>, vector<1x16x256xf32>
    %c0_2 = arith.constant 0 : index
    %c0_3 = arith.constant 0 : index
    %1 = vector.load %arg2[%c0_2, %c0_3] : memref<2x16xf32, #tpu.memory_space<vmem>>, vector<1x16xf32>
    %c1 = arith.constant 1 : index
    %c0_4 = arith.constant 0 : index
    %2 = vector.load %arg2[%c1, %c0_4] : memref<2x16xf32, #tpu.memory_space<vmem>>, vector<1x16xf32>
    %c0_5 = arith.constant 0 : index
    %c0_6 = arith.constant 0 : index
    %3 = vector.load %arg3[%c0_5, %c0_6] : memref<3x4xf32, #tpu.memory_space<vmem>>, vector<1x4xf32>
    %c1_7 = arith.constant 1 : index
    %c0_8 = arith.constant 0 : index
    %4 = vector.load %arg3[%c1_7, %c0_8] : memref<3x4xf32, #tpu.memory_space<vmem>>, vector<1x4xf32>
    %c2 = arith.constant 2 : index
    %c0_9 = arith.constant 0 : index
    %5 = vector.load %arg3[%c2, %c0_9] : memref<3x4xf32, #tpu.memory_space<vmem>>, vector<1x4xf32>
    %6 = vector.shape_cast %1 : vector<1x16xf32> to vector<1x1x16xf32>
    "tpu.trace_start"() <{level = 10 : i32, message = "boc,bcs->bos"}> : () -> ()
    %cst = arith.constant dense<0.000000e+00> : vector<1x1x256xf32>
    %7 = tpu.matmul %6, %0, %cst {dimension_numbers = #tpu.dot_dimension_numbers<[2], [1], [1], [2], [0, 0, 0, 1, 1, 2], [0], [0]>} : vector<1x1x16xf32>, vector<1x16x256xf32>, vector<1x1x256xf32> -> vector<1x1x256xf32>
    "tpu.trace_stop"() : () -> ()
    %cst_10 = arith.constant dense<0xFF800000> : vector<1x1xf32>
    %8 = vector.multi_reduction <maximumf>, %7, %cst_10 [2] : vector<1x1x256xf32> to vector<1x1xf32>
    %9 = vector.shape_cast %8 : vector<1x1xf32> to vector<1x1x1xf32>
    %10 = vector.broadcast %9 : vector<1x1x1xf32> to vector<1x1x256xf32>
    %11 = arith.subf %7, %10 : vector<1x1x256xf32>
    %12 = math.exp %11 : vector<1x1x256xf32>
    %cst_11 = arith.constant dense<0.000000e+00> : vector<1x1xf32>
    %13 = vector.multi_reduction <add>, %12, %cst_11 [2] : vector<1x1x256xf32> to vector<1x1xf32>
    %14 = vector.shape_cast %13 : vector<1x1xf32> to vector<1x1x1xf32>
    %15 = tpu.reciprocal %14 : vector<1x1x1xf32> -> vector<1x1x1xf32>
    %16 = vector.broadcast %15 : vector<1x1x1xf32> to vector<1x1x256xf32>
    %17 = arith.mulf %12, %16 : vector<1x1x256xf32>
    "tpu.trace_start"() <{level = 10 : i32, message = "bos,bcs->boc"}> : () -> ()
    %cst_12 = arith.constant dense<0.000000e+00> : vector<1x1x16xf32>
    %18 = tpu.matmul %17, %0, %cst_12 {dimension_numbers = #tpu.dot_dimension_numbers<[2], [2], [1], [1], [0, 0, 0, 1, 1, 1], [0], [0]>} : vector<1x1x256xf32>, vector<1x16x256xf32>, vector<1x1x16xf32> -> vector<1x1x16xf32>
    "tpu.trace_stop"() : () -> ()
    %c0_13 = arith.constant 0 : index
    %c0_14 = arith.constant 0 : index
    %19 = vector.load %arg4[%c0_13, %c0_14] : memref<16x4xf32, #tpu.memory_space<vmem>>, vector<16x4xf32>
    "tpu.trace_start"() <{level = 10 : i32, message = "boc,cp->bop"}> : () -> ()
    %cst_15 = arith.constant dense<0.000000e+00> : vector<1x1x4xf32>
    %20 = tpu.matmul %18, %19, %cst_15 {dimension_numbers = #tpu.dot_dimension_numbers<[2], [0], [0, 1], [1], [0, 0, 0, 1, 1, 1], [], []>} : vector<1x1x16xf32>, vector<16x4xf32>, vector<1x1x4xf32> -> vector<1x1x4xf32>
    "tpu.trace_stop"() : () -> ()
    %21 = vector.shape_cast %3 : vector<1x4xf32> to vector<1x1x4xf32>
    %22 = arith.addf %20, %21 : vector<1x1x4xf32>
    %cst_16 = arith.constant dense<0.000000e+00> : vector<1x1xf32>
    %23 = vector.multi_reduction <add>, %22, %cst_16 [2] : vector<1x1x4xf32> to vector<1x1xf32>
    %24 = vector.shape_cast %23 : vector<1x1xf32> to vector<1x1x1xf32>
    %cst_17 = arith.constant 4.000000e+00 : f32
    %25 = vector.broadcast %cst_17 : f32 to vector<1x1x1xf32>
    %26 = arith.divf %24, %25 : vector<1x1x1xf32>
    %27 = vector.broadcast %26 : vector<1x1x1xf32> to vector<1x1x4xf32>
    %28 = arith.subf %22, %27 : vector<1x1x4xf32>
    %29 = arith.mulf %28, %28 : vector<1x1x4xf32>
    %cst_18 = arith.constant dense<0.000000e+00> : vector<1x1xf32>
    %30 = vector.multi_reduction <add>, %29, %cst_18 [2] : vector<1x1x4xf32> to vector<1x1xf32>
    %31 = vector.shape_cast %30 : vector<1x1xf32> to vector<1x1x1xf32>
    %cst_19 = arith.constant 4.000000e+00 : f32
    %32 = vector.broadcast %cst_19 : f32 to vector<1x1x1xf32>
    %33 = arith.divf %31, %32 : vector<1x1x1xf32>
    %34 = vector.broadcast %26 : vector<1x1x1xf32> to vector<1x1x4xf32>
    %35 = arith.subf %22, %34 : vector<1x1x4xf32>
    %cst_20 = arith.constant 9.99999974E-6 : f32
    %36 = vector.broadcast %cst_20 : f32 to vector<1x1x1xf32>
    %37 = arith.addf %33, %36 : vector<1x1x1xf32>
    %38 = math.rsqrt %37 : vector<1x1x1xf32>
    %39 = vector.broadcast %38 : vector<1x1x1xf32> to vector<1x1x4xf32>
    %40 = arith.mulf %35, %39 : vector<1x1x4xf32>
    %41 = vector.shape_cast %4 : vector<1x4xf32> to vector<1x1x4xf32>
    %42 = arith.mulf %40, %41 : vector<1x1x4xf32>
    %43 = vector.shape_cast %5 : vector<1x4xf32> to vector<1x1x4xf32>
    %44 = arith.addf %42, %43 : vector<1x1x4xf32>
    %cst_21 = arith.constant 0.000000e+00 : f32
    %45 = vector.broadcast %cst_21 : f32 to vector<1x1x4xf32>
    %46 = arith.maximumf %44, %45 : vector<1x1x4xf32>
    %c0_22 = arith.constant 0 : index
    %c0_23 = arith.constant 0 : index
    %47 = vector.load %arg5[%c0_22, %c0_23] : memref<16x4xf32, #tpu.memory_space<vmem>>, vector<16x4xf32>
    "tpu.trace_start"() <{level = 10 : i32, message = "bop,cp->boc"}> : () -> ()
    %cst_24 = arith.constant dense<0.000000e+00> : vector<1x1x16xf32>
    %48 = tpu.matmul %46, %47, %cst_24 {dimension_numbers = #tpu.dot_dimension_numbers<[2], [1], [0, 1], [0], [0, 0, 0, 1, 1, 0], [], []>} : vector<1x1x4xf32>, vector<16x4xf32>, vector<1x1x16xf32> -> vector<1x1x16xf32>
    "tpu.trace_stop"() : () -> ()
    %49 = vector.shape_cast %2 : vector<1x16xf32> to vector<1x1x16xf32>
    %50 = arith.addf %48, %49 : vector<1x1x16xf32>
    %51 = vector.shape_cast %50 : vector<1x1x16xf32> to vector<1x16x1xf32>
    %52 = vector.broadcast %51 : vector<1x16x1xf32> to vector<1x16x256xf32>
    %53 = arith.addf %0, %52 : vector<1x16x256xf32>
    %c0_25 = arith.constant 0 : index
    %c0_26 = arith.constant 0 : index
    %c0_27 = arith.constant 0 : index
    %54 = vector.load %arg6[%c0_25, %c0_26, %c0_27] : memref<1x16x256xf32, #tpu.memory_space<vmem>>, vector<1x16x256xf32>
    tpu.vector_store %arg6[%c0_25, %c0_26, %c0_27], %53 {strides = array<i32>} : memref<1x16x256xf32, #tpu.memory_space<vmem>>, vector<1x16x256xf32>,
    return
  }
  func.func @transform_0(%arg0: i32) -> (i32, i32, i32) {
    %c0_i32 = arith.constant 0 : i32
    %c0_i32_0 = arith.constant 0 : i32
    %c0_i32_1 = arith.constant 0 : i32
    return %arg0, %c0_i32, %c0_i32_0 : i32, i32, i32
  }
  func.func @transform_1(%arg0: i32) -> (i32, i32) {
    %c0_i32 = arith.constant 0 : i32
    %c0_i32_0 = arith.constant 0 : i32
    %c0_i32_1 = arith.constant 0 : i32
    return %c0_i32, %c0_i32_0 : i32, i32
  }
  func.func @transform_2(%arg0: i32) -> (i32, i32) {
    %c0_i32 = arith.constant 0 : i32
    %c0_i32_0 = arith.constant 0 : i32
    %c0_i32_1 = arith.constant 0 : i32
    return %c0_i32, %c0_i32_0 : i32, i32
  }
  func.func @transform_3(%arg0: i32) -> (i32, i32) {
    %c0_i32 = arith.constant 0 : i32
    %c0_i32_0 = arith.constant 0 : i32
    %c0_i32_1 = arith.constant 0 : i32
    return %c0_i32, %c0_i32_0 : i32, i32
  }
  func.func @transform_4(%arg0: i32) -> (i32, i32) {
    %c0_i32 = arith.constant 0 : i32
    %c0_i32_0 = arith.constant 0 : i32
    %c0_i32_1 = arith.constant 0 : i32
    return %c0_i32, %c0_i32_0 : i32, i32
  }
  func.func @transform_5(%arg0: i32) -> (i32, i32, i32) {
    %c0_i32 = arith.constant 0 : i32
    %c0_i32_0 = arith.constant 0 : i32
    %c0_i32_1 = arith.constant 0 : i32
    return %arg0, %c0_i32, %c0_i32_0 : i32, i32, i32
  }
}

</mosaic_0001>

<bundles_post_ra>
// kernel: tpu_custom_call.1
= control target key start
LH: loop header
LB: loop body
LE: loop exit
PB: predicated region body
PF: predicated region fallthrough
CT: control target
= control target key end

     0   :  { %10 = vsyncpa [#allocation3], 0  ;;  %s1152_s0 = inlined_call_operand.hbm [shape: f32[2,16,256], index: 0, kind: input, shape index: {}]   ;;  %s1153_s1 = inlined_call_operand.vmem [shape: f32[2,16], index: 1, kind: input, shape index: {}]   ;;  %s1154_s2 = inlined_call_operand.vmem [shape: f32[3,4], index: 2, kind: input, shape index: {}]   ;;  %s1155_s3 = inlined_call_operand.vmem [shape: f32[16,4], index: 3, kind: input, shape index: {}]   ;;  %s1156_s4 = inlined_call_operand.vmem [shape: f32[16,4], index: 4, kind: input, shape index: {}]   ;;  %s1157_s5 = inlined_call_operand.hbm [shape: f32[2,16,256], index: 5, kind: output, shape index: {}]  }
   0x1   :  { %12 = vsyncpa [#allocation3 + $0x1], 0 }
   0x2   :  { %13 = vsyncpa [#allocation4], 0 }
   0x3   :  { %15 = vsyncpa [#allocation4 + $0x1], 0  ;;  %s931_s18 = smov 0   ;;  %s933_s19 = smov 0  }
   0x4   :  { %s935_s20 = smov 0   ;;  %s937_s21 = smov 0  }
   0x5 LB: > { %s952_s22 = sadd.s32 4294967295, %s891_s21   ;;  %s698_s23 = sadd.s32 4294967294, %s891_s21   ;;  %s891_s21 = sphi %s937_s21, %s1172_s21   ;;  %s887_s20 = sphi %s935_s20, %s1171_s20   ;;  %s883_s19 = sphi %s933_s19, %s1170_s19   ;;  %s879_s18 = sphi %s931_s18, %s1169_s18  }
   0x6   : > { %s956_s24 = sadd.s32 1, %s891_s21   ;;  %s28_s25 = sadd.s32 1, %s887_s20 }
   0x7   : > { %s25_s26 = ssub.s32 %s891_s21, %s956_s24  ;;  %p35_p0 = scmp.ne.s32.totalorder %s887_s20, %s883_s19 }
   0x8   : > { %p26_p1 = scmp.eq.s32.totalorder %s25_s26, 0  ;;  %p36_p2 = scmp.eq.s32.totalorder %s891_s21, 0 }
   0x9   : > { %p41_p3 = scmp.ne.s32.totalorder %s883_s19, %s879_s18  ;;  %p42_p4 = scmp.eq.s32.totalorder %s952_s22, 0 }
   0xa   : > { %s968_s27 = scalar_select %p26_p1, %s887_s20, %s28_s25  }
   0xb   : > { %p970_p5 = por %p36_p2, %p35_p0  ;;  %p974_p6 = por %p42_p4, %p41_p3 }
   0xc   : > { %p149_p7 = scmp.eq.s32.totalorder %s952_s22, 1  ;;  %p155_p8 = scmp.eq.s32.totalorder %s698_s23, 1 }
   0xd   : > { %s1161_s29 = scalar_select %p974_p6, 1, 0 }
   0xe   : > { %p751_p10 = scmp.lt.s32.totalorder %s891_s21, 2  ;;  %p981_p11 = por %p149_p7, %p35_p0 }
   0xf   : > { %p985_p12 = por %p155_p8, %p41_p3  ;;  %s187_s7 = sand.u32 1, %s887_s20  }
  0x10   : > { %s1162_s30 = scalar_select %p981_p11, 1, 0 }
  0x11   : > { %s1163_s6 = scalar_select %p985_p12, 1, 0 }
  0x12   : > { %s717_s8 = sshll.u32 %s891_s21, 9  ;;  %s701_s9 = sshll.u32 %s187_s7, 5 }
  0x13   : > { %s994_s12 = scalar_lea.hbm %s1152_s0, %s717_s8  ;;  %s191_s13 = scalar_lea.vmem [#allocation2], %s701_s9 }
  0x14   : > { %s198_s14 = sshll.u32 %s191_s13, 4  ;;  %p998_p13 = pnand %p751_p10, %p970_p5  ;;  %s1002_s14 = int_to_ptr.vmem [resolvable:$true] %s198_s14 }
  0x15   : > { %s1004_s16 = scalar_lea.sflag [#allocation3], %s187_s7  ;;  %s799_s17 = scalar_lea.hbm %s994_s12, 512 }
  0x16   : > { %p800_p0 = scmp.ne.s32.totalorder %s994_s12, %s799_s17  ;;  %p801_p1 = pneg %p998_p13 }
  0x17   : > { %s804_s26 = scalar_lea.hbm %s1152_s0, 1024  ;;  %p805_p4 = scmp.lt.s32.totalorder %s994_s12, %s1152_s0 }
  0x18   : > { %p802_p2 = pnand %p801_p1, %p800_p0  ;;  %p806_p5 = scmp.lt.s32.totalorder %s804_s26, %s799_s17 }
  0x1a   : > { %p803_p3 = pneg %p802_p2  ;;  %p807_p7 = por %p806_p5, %p805_p4 }
  0x1c   : > { %p808_p8 = pnand %p807_p7, %p803_p3 }
  0x1e   : > { %811 = shalt.err (!%p808_p8)
}
  0x1f   : > { %s812_s7 = scalar_lea.vmem %s1002_s14, 512  ;;  %s893_s9 = smov [#allocation2]  }
  0x20   : > { %p813_p10 = scmp.ne.s32.totalorder %s1002_s14, %s812_s7  ;;  %s817_s10 = sshll.u32 %s893_s9, 4  ;;  %s818_s10 = int_to_ptr.vmem [resolvable:$false] %s817_s10 }
  0x21   : > { %s819_s11 = scalar_lea.vmem %s818_s10, 1024  ;;  %p820_p2 = scmp.lt.s32.totalorder %s1002_s14, %s818_s10 }
  0x22   : > { %p815_p9 = pnand %p813_p10, %p801_p1  ;;  %p821_p12 = scmp.lt.s32.totalorder %s819_s11, %s812_s7 }
  0x24   : > { %p816_p0 = pneg %p815_p9  ;;  %p822_p11 = por %p821_p12, %p820_p2 }
  0x26   : > { %p823_p6 = pnand %p822_p11, %p816_p0 }
  0x28   : > { %826 = shalt.err (!%p823_p6)
}
  0x29   : > { %s894_s13 = smov 256   ;;  %s895_s17 = smov 16  }
  0x2a   : > { %746 = dma.hbm_to_vmem [thread:$0]  (!%p998_p13), %s994_s12, 512, %s1002_s14, %s1004_s16, %s894_s13, %s894_s13, %s895_s17  }
  0x2b   : > { %p704_p9 = scmp.ge.s32.totalorder %s891_s21, 1  ;;  %p206_p1 = scmp.lt.s32.totalorder %s891_s21, 3 }
  0x2d   : > { %p207_p3 = pnand %p704_p9, %p206_p1 }
  0x2e   : > { %s1028_s23 = sand.u32 (!%p207_p3), 1, %s883_s19   ;;  %p1165_p6 = scmp.ne.s32.totalorder (!%p207_p3), %s1161_s29, 0 }
  0x2f   : > { %210 = sbr.rel (%p207_p3) target bundleno = 1599 (0x63f), region = 40  ;;  %s705_s25 = sshll.u32 (!%p207_p3), %s1028_s23, 5 }
  0x30   : > { %s213_s26 = scalar_lea.sflag (!%p207_p3), [#allocation3], %s1028_s23  ;;  %s216_s28 = scalar_lea.vmem (!%p207_p3), [#allocation2], %s705_s25 }
  0x34   : > { %870 = dma.done.wait (%p1165_p6), %s213_s26, 512  }
  0x35   : > { %872 = vsyncadd (%p1165_p6), %s213_s26, 4294966784  ;;  %v896_v0 = vmov 0.0   ;;  %v1040_v1 = vld [vmem:[%s216_s28 + $0x18] sm:$0xff]  ;;  %v1042_v2 = vld [vmem:[%s216_s28 + $0x10] sm:$0xff]  ;;  %vm252_vm0 = vcmask 130048   ;;  %vm327_vm1 = vcmask 1040384   ;;  %v592_v51 = vlaneseq }
  0x36   : > { %320 = vmatprep.mubr.f32.mxu1 %v896_v0  ;;  %725 = vmatprep.subr.mxu0 %v896_v0  ;;  %v1044_v3 = vld [vmem:[%s216_s28 + $0x8] sm:$0xff]  ;;  %v1047_v4 = vld [vmem:[%s216_s28] sm:$0xff]  ;;  %vm897_vm2 = vmmov 0   ;;  %vm492_vm3 = vcmask 24576   ;;  %vm512_vm4 = vcmask 31744   ;;  %s242_s16 = scalar_lea.vmem [#allocation5], %s705_s25 }
  0x37   : > { %284 = vmatprep.subr.mxu1 %v1040_v1  ;;  %v247_v5 = vld [vmem:[%s1153_s1] sm:$0x1]  ;;  %v418_v21 = vld [vmem:[%s1155_s3 + $0x8] sm:$0xff]  ;;  %729 = vmatprep.mubr.msk.f32.mxu0 %vm897_vm2, %v896_v0  ;;  %v250_v45 = vld [vmem:[%s1154_s2 + $0x1] sm:$0x1]  ;;  %v593_v52 = vshrl.u32 %v592_v51, 7 }
  0x38   : > { %285 = vmatpush1.msra.mxu1 %v1042_v2  ;;  %726 = vmatpush3.msra.mxu0 %v418_v21  ;;  %v417_v26 = vld [vmem:[%s1155_s3] sm:$0xff]  ;;  %v511_v39 = vld [vmem:[%s1156_s4 + $0x8] sm:$0xff]  ;;  %s625_s8 = sshll.u32 %s242_s16, 4  ;;  %s718_s7 = sshll.u32 %s952_s22, 9  ;;  %s1100_s8 = int_to_ptr.vmem [resolvable:$true] %s625_s8 }
  0x39   : > { %286 = vmatprep.subr.mxu1 %v1044_v3  ;;  %727 = vmatprep.subr.mxu0 %v896_v0  ;;  %v249_v29 = vld [vmem:[%s1154_s2] sm:$0x1]  ;;  %v251_v47 = vld [vmem:[%s1154_s2 + $0x2] sm:$0x1]  ;;  %v248_v53 = vld [vmem:[%s1153_s1 + $0x1] sm:$0x1]  ;;  %s1105_s11 = scalar_lea.hbm %s1157_s5, %s718_s7 }
  0x3a   : > { %287 = vmatpush1.msra.mxu1 %v1047_v4  ;;  %728 = vmatpush3.msra.mxu0 %v417_v26  ;;  %v510_v40 = vld [vmem:[%s1156_s4] sm:$0xff]  ;;  %v594_v54 = vsub.s32 0, %v593_v52  ;;  %s612_s22 = scalar_lea.sflag [#allocation4], %s1028_s23  ;;  %s827_s25 = scalar_lea.vmem %s1100_s8, 512 }
  0x3b   : > { %707 = vmatmul.mubr.msk.f32.vlgmr.msra.gmra.mxu1 %vm252_vm0, %v247_v5  ;;  %375 = vmatprep.subr.mxu1 %v1040_v1  ;;  %p828_p11 = scmp.ne.s32.totalorder %s1100_s8, %s827_s25  ;;  %p1166_p12 = scmp.ne.s32.totalorder %s1162_s30, 0 }
  0x3c   : > { %376 = vmatpush1.xpose.msra.mxu1 %v1042_v2  ;;  %732 = vmatprep.subr.mxu0 %v896_v0  ;;  %s898_s13 = smov [#allocation5]  }
  0x3d   : > { %377 = vmatprep.subr.mxu1 %v1044_v3  ;;  %p829_p13 = pnand %p828_p11, %p1166_p12  ;;  %s831_s17 = sshll.u32 %s898_s13, 4  ;;  %s832_s17 = int_to_ptr.vmem [resolvable:$false] %s831_s17 }
  0x3e   : > { %s833_s26 = scalar_lea.vmem %s832_s17, 1024  ;;  %p834_p5 = scmp.lt.s32.totalorder %s1100_s8, %s832_s17 }
  0x3f   : > { %p830_p4 = pneg %p829_p13  ;;  %p835_p7 = scmp.lt.s32.totalorder %s833_s26, %s827_s25 }
  0x40   : > { %378 = vmatpush1.xpose.msra.mxu1 %v1047_v4 }
  0x41   : > { %p836_p8 = por %p835_p7, %p834_p5 }
  0x43   : > { %p837_p10 = pnand %p836_p8, %p830_p4 }
  0xfb   : > { %v322_v6 = vpop.f32.mrf.mxu1 }
  0xfc   : > { %v328_v8 = vsel %vm327_vm1, %v322_v6, -inf }
  0xfd   : > { %v324_v7 = vpop.f32.mrf.mxu1 }
  0xfe   : > { %v329_v9 = vsel %vm327_vm1, %v324_v7, -inf }
  0xff   : > { %v330_v10 = vmax.f32 %v328_v8, %v329_v9 }
 0x101   : > { %331 = vmax.xlane.f32.xlu0 %v330_v10 }
 0x18a   : > { %v332_v11 = vpop.xlane.xlu0 %331 }
 0x18b   : > { %v333_v12 = vsub.f32 %v322_v6, %v332_v11  ;;  %v334_v13 = vsub.f32 %v324_v7, %v332_v11 }
 0x18d   : > { %v335_v14 = vmul.f32 1.442695, %v333_v12  ;;  %v337_v15 = vmul.f32 1.442695, %v334_v13 }
 0x18f   : > { %791 = vpow2.f32 %v335_v14 }
 0x190   : > { %793 = vpow2.f32 %v337_v15 }
 0x19c   : > { %v792_v16 = vpop.eup %791 }
 0x19d   : > { %v794_v17 = vpop.eup %793  ;;  %v339_v18 = vsel %vm327_vm1, %v792_v16, 0.0 }
 0x19e   : > { %v340_v19 = vsel %vm327_vm1, %v794_v17, 0.0 }
 0x19f   : > { %v341_v20 = vadd.f32 %v340_v19, %v339_v18 }
 0x1a1   : > { %342 = vadd.xlane.f32.xlu0 %v341_v20 }
 0x22a   : > { %v343_v22 = vpop.xlane.xlu0 %342 }
 0x22b   : > { %795 = vrcp.f32 %v343_v22 }
 0x238   : > { %v796_v23 = vpop.eup %795 }
 0x239   : > { %v346_v24 = vmul.f32 %v796_v23, %v794_v17  ;;  %v345_v25 = vmul.f32 %v796_v23, %v792_v16 }
 0x23b   : > { %411 = vmatprep.mubr.f32.mxu1 %v346_v24 }
 0x23c   : > { %412 = vmatmul.mubr.f32.vlgmr.msra.gmra.mxu1 %v345_v25 }
 0x2fc   : > { %v413_v27 = vpop.f32.mrf.mxu1 }
 0x2fd   : > { %730 = vmatmul.mubr.msk.f32.vlgmr.msra.gmra.mxu0 %vm252_vm0, %v413_v27 }
 0x2fe   : > { %v415_v28 = vpop.f32.mrf.mxu1  ;;  %736 = vmatprep.mubr.msk.f32.mxu0 %vm897_vm2, %v896_v0  ;;  %733 = vmatpush3.xpose.msk.msra.mxu0 %vm512_vm4, %v511_v39 }
 0x2ff   : > { %734 = vmatprep.subr.mxu0 %v896_v0 }
 0x302   : > { %735 = vmatpush3.xpose.msk.msra.mxu0 %vm512_vm4, %v510_v40 }
 0x3bd   : > { %v488_v30 = vpop.f32.mrf.mxu0 }
 0x3be   : > { %v489_v31 = vadd.f32 %v488_v30, %v249_v29 }
 0x3bf   : > { %v731_v32 = vpop.f32.mrf.mxu0 }
 0x3c0   : > { %v493_v33 = vsel %vm492_vm3, %v489_v31, 0.0 }
 0x3c1   : > { %494 = vadd.xlane.f32.xlu1 %v493_v33 }
 0x44a   : > { %v495_v34 = vpop.xlane.xlu1 %494 }
 0x44b   : > { %v497_v35 = vmul.f32 0.25, %v495_v34 }
 0x44d   : > { %v498_v36 = vsub.f32 %v489_v31, %v497_v35 }
 0x44f   : > { %v499_v37 = vmul.f32 %v498_v36, %v498_v36 }
 0x451   : > { %v500_v38 = vsel %vm492_vm3, %v499_v37, 0.0 }
 0x452   : > { %501 = vadd.xlane.f32.xlu1 %v500_v38 }
 0x4db   : > { %v502_v41 = vpop.xlane.xlu1 %501 }
 0x4dc   : > { %v503_v42 = vmul.f32 0.25, %v502_v41 }
 0x4de   : > { %v504_v43 = vadd.f32 1e-05, %v503_v42 }
 0x4e0   : > { %797 = vrsqrt.f32 %v504_v43 }
 0x4ed   : > { %v798_v44 = vpop.eup %797 }
 0x4ee   : > { %v506_v46 = vmul.f32 %v798_v44, %v498_v36 }
 0x4f0   : > { %v507_v48 = vmul.f32 %v506_v46, %v250_v45 }
 0x4f2   : > { %v508_v49 = vadd.f32 %v507_v48, %v251_v47 }
 0x4f4   : > { %v509_v50 = vmax.f32 %v508_v49, 0.0 }
 0x4f6   : > { %737 = vmatmul.mubr.msk.f32.vlgmr.msra.gmra.mxu0 %vm512_vm4, %v509_v50 }
 0x5b6   : > { %v588_v55 = vpop.f32.mrf.mxu0 }
 0x5b7   : > { %v589_v56 = vadd.f32 %v588_v55, %v248_v53 }
 0x5b8   : > { %v738_v57 = vpop.f32.mrf.mxu0 }
 0x5b9   : > { %v595_v58 = vrot.slane %v589_v56, %v594_v54 }
 0x5bb   : > { %601 = vbcast.lane.b32.xlu1 %v595_v58, 264  ;;  %597 = vbcast.lane.b32.xlu0 %v595_v58, 256 }
 0x62d   : > { %v602_v59 = vpop.permute.xlu1 %601  ;;  %v598_v60 = vpop.permute.xlu0 %597 }
 0x62e   : > { %v605_v61 = vadd.f32 %v602_v59, %v1042_v2  ;;  %v606_v62 = vadd.f32 %v602_v59, %v1040_v1  ;;  %v603_v63 = vadd.f32 %v598_v60, %v1047_v4  ;;  %v604_v0 = vadd.f32 %v598_v60, %v1044_v3 }
 0x630   : > { %609 = vst [vmem:[%s242_s16 + $0x10] sm:$0xff] %v605_v61  ;;  %610 = vst [vmem:[%s242_s16 + $0x18] sm:$0xff] %v606_v62 }
 0x631   : > { %607 = vst [vmem:[%s242_s16] sm:$0xff] %v603_v63  ;;  %608 = vst [vmem:[%s242_s16 + $0x8] sm:$0xff] %v604_v0 }
 0x632   : > { %840 = shalt.err (!%p837_p10)
}
 0x633   : > { %s841_s28 = scalar_lea.hbm %s1105_s11, 512  ;;  %s845_s14 = scalar_lea.hbm %s1157_s5, 1024 }
 0x634   : > { %p842_p0 = scmp.ne.s32.totalorder %s1105_s11, %s841_s28  ;;  %p846_p1 = scmp.lt.s32.totalorder %s1105_s11, %s1157_s5 }
 0x635   : > { %p847_p3 = scmp.lt.s32.totalorder %s845_s14, %s841_s28 }
 0x636   : > { %p843_p2 = pnand %p842_p0, %p1166_p12 }
 0x637   : > { %p848_p6 = por %p847_p3, %p846_p1 }
 0x638   : > { %p844_p9 = pneg %p843_p2 }
 0x63a   : > { %p849_p11 = pnand %p848_p6, %p844_p9 }
 0x63c   : > { %852 = shalt.err (!%p849_p11)
}
 0x63d   : > { %s899_s7 = smov 256   ;;  %s900_s9 = smov 16  }
 0x63e   : > { %741 = dma.vmem_to_hbm [thread:$0]  (%p1166_p12), %s1100_s8, 512, %s1105_s11, %s612_s22, %s899_s7, %s899_s7, %s900_s9  }
 0x63f PF: > { %s640_s10 = sand.u32 1, %s879_s18   ;;  %p1167_p13 = scmp.ne.s32.totalorder %s1163_s6, 0 }
 0x640   : > { %p1168_p4 = scmp.ge.s32.totalorder %s891_s21, 2  ;;  %s641_s25 = scalar_lea.sflag [#allocation4], %s640_s10 }
 0x642   : > { %p748_p5 = pnand %p1168_p4, %p1167_p13 }
 0x644   : > { %p749_p7 = pneg %p748_p5 }
 0x646   : > { %874 = dma.done.wait (%p749_p7), %s641_s25, 512  }
 0x647   : > { %876 = vsyncadd (%p749_p7), %s641_s25, 4294966784  ;;  %p18_p8 = scmp.ge.s32.totalorder %s956_s24, 4   ;;  %s1169_s18 = smov %s883_s19 }
 0x648   : > { %s1170_s19 = smov %s887_s20  ;;  %s1171_s20 = smov %s968_s27 }
 0x649   : > { %s1172_s21 = smov %s956_s24  ;;  %20 = sbr.rel (!%p18_p8) target bundleno = 5 (0x5), region = 85 }
 0x64e   :  { %646 = vsyncpa [#allocation3], 1 }
 0x64f   :  { %648 = vsyncpa [#allocation3 + $0x1], 1 }
 0x650   :  { %649 = vsyncpa [#allocation4], 1 }
 0x651   :  { %651 = vsyncpa [#allocation4 + $0x1], 1 }

</bundles_post_ra>
